<compile_context>
chip_gen: v5e
topology: v5e:2x2
jax: 0.10.0
libtpu: 0.0.40
codegen_flags: <defaults>
</compile_context>

<pallas_src>
import math

import jax
import jax.numpy as jnp
from jax.experimental import pallas as pl
from jax.experimental.pallas import tpu as pltpu


def _layer_scale_kernel(x_ref, g_ref, o_ref):
    # gamma is a single (1, D) row: casting it to x's dtype is negligible and
    # keeps the tile-sized multiply in the input dtype -- no full-tile f32
    # temporary inflating the VMEM working set. The multiply itself is free
    # under the DMA roofline.
    o_ref[...] = x_ref[...] * g_ref[...].astype(x_ref.dtype)


def _round_down(x, m):
    return (x // m) * m


def _round_up(x, m):
    return ((x + m - 1) // m) * m


def _hw_info():
    """(num_tensorcores, vmem_capacity_bytes) with conservative fallbacks."""
    cores, vmem_cap = 1, 64 * 1024 * 1024  # v7x-safe defaults
    try:
        info = pltpu.get_tpu_info()
        cap = getattr(info, "vmem_capacity_bytes", None)
        if cap:
            vmem_cap = int(cap)
        for name in ("num_cores", "num_tensorcores", "tensorcores_per_chip",
                     "cores_per_chip", "core_count"):
            val = getattr(info, name, None)
            if val:
                cores = int(val)
                break
    except Exception:
        pass
    return cores, vmem_cap


def _lane_fold_factor(rows, d):
    """Smallest F with (F * d) % 128 == 0 and rows % F == 0 (else 1)."""
    if d % 128 == 0:
        return 1
    f = 128 // math.gcd(d, 128)
    if 1 < f <= rows and rows % f == 0 and f * d <= 64 * 128:
        return f
    return 1


def _pick_rows_tile(rows, d, itemsize, num_cores, vmem_cap):
    """Largest row tile sized by bytes (HBM-roofline friendly), VMEM-budgeted."""
    sub = 8 * max(1, 4 // itemsize)  # sublane granularity for this dtype
    if rows <= sub:
        return rows
    # Per-tile byte target: >= ~2 MiB reaches ~85% of HBM roofline; the
    # (x tile + out tile) * 2 pipeline buffers working set (4 * tile_bytes)
    # must stay well under physical VMEM on every generation (v7x: 64 MiB).
    tile_bytes = min(8 << 20, vmem_cap // 8)
    row_bytes = d * itemsize
    max_tile_rows = max(sub, _round_down(tile_bytes // row_bytes, sub))

    if num_cores > 1:
        # Megacore (v7x): give each TensorCore >= 2 grid steps and a step
        # count that divides evenly across cores, but never shrink a tile
        # below ~1 MiB just to manufacture steps.
        steps = pl.cdiv(rows, max_tile_rows)
        want = _round_up(max(steps, 2 * num_cores), num_cores)
        cand = max(sub, _round_up(pl.cdiv(rows, want), sub))
        min_tile_rows = max(sub, _round_down((1 << 20) // row_bytes, sub))
        if min_tile_rows <= cand < max_tile_rows:
            max_tile_rows = cand
    # Single-TC chips (v5e/v6e): the grid is a serial loop -- never shrink
    # tiles just to add steps; keep the biggest tile that fits the budget.
    return min(max_tile_rows, rows)


def layer_scale(x, gamma, inplace=False):
    """Pallas TPU implementation of LayerScale.forward: x * gamma.

    x:       any shape (..., dim)
    gamma:   shape (dim,)
    inplace: alias the output onto x's buffer (serves the module's
             inplace=True path; callers should donate x for zero-copy).
    Output has the same shape and dtype as x.
    """
    orig_shape = x.shape
    d = orig_shape[-1]
    assert gamma.shape == (d,), "gamma must have shape (dim,)"

    rows = 1
    for s in orig_shape[:-1]:
        rows *= s
    if rows == 0 or d == 0:
        return x

    # Lane folding: if dim is not a multiple of 128, fold rows into the lane
    # axis (a pure reshape of the contiguous buffer) and tile gamma, so the
    # output stays lane-dense (avoids masked vst.msk partial stores).
    fold = _lane_fold_factor(rows, d)
    rows_f, d_f = rows // fold, d * fold
    x2d = x.reshape(rows_f, d_f)
    g_row = gamma if fold == 1 else jnp.tile(gamma, fold)
    g2d = g_row.reshape(1, d_f)

    itemsize = jnp.dtype(x.dtype).itemsize
    num_cores, vmem_cap = _hw_info()
    rows_tile = _pick_rows_tile(rows_f, d_f, itemsize, num_cores, vmem_cap)
    grid = (pl.cdiv(rows_f, rows_tile),)  # Pallas handles the partial last block

    working_set = 4 * rows_tile * d_f * itemsize  # (x + out) double-buffered
    vmem_limit = int(min(vmem_cap * 3 // 4, max(48 << 20, 2 * working_set)))

    out2d = pl.pallas_call(
        _layer_scale_kernel,
        out_shape=jax.ShapeDtypeStruct((rows_f, d_f), x.dtype),
        grid=grid,
        in_specs=[
            pl.BlockSpec((rows_tile, d_f), lambda i: (i, 0)),
            pl.BlockSpec((1, d_f), lambda i: (0, 0)),  # gamma: same block every step
        ],
        out_specs=pl.BlockSpec((rows_tile, d_f), lambda i: (i, 0)),
        input_output_aliases=({0: 0} if inplace else {}),
        compiler_params=pltpu.CompilerParams(
            dimension_semantics=("parallel",),
            vmem_limit_bytes=vmem_limit,
        ),
    )(x2d, g2d)
    return out2d.reshape(orig_shape)


if __name__ == "__main__":
    key = jax.random.PRNGKey(0)
    k_x, k_g = jax.random.split(key)

    # Transformer-token layout implied by the module: (batch, seq, dim).
    B, S, D = 2, 16, 128
    init_values = 1e-5

    # 1) float32 input with the module's default gamma (init_values * ones).
    x = jax.random.normal(k_x, (B, S, D), dtype=jnp.float32)
    gamma = init_values * jnp.ones((D,), dtype=jnp.float32)
    out = jax.block_until_ready(layer_scale(x, gamma))
    assert out.shape == x.shape and out.dtype == x.dtype
    assert jnp.allclose(out, x * gamma, atol=1e-6, rtol=1e-6), "f32 default-gamma mismatch"

    # 2) non-trivial ("trained") gamma.
    gamma2 = jax.random.normal(k_g, (D,), dtype=jnp.float32)
    out2 = jax.block_until_ready(layer_scale(x, gamma2))
    assert jnp.allclose(out2, x * gamma2, atol=1e-6, rtol=1e-6), "f32 gamma mismatch"

    # 3) bf16 input: bf16 I/O (half the HBM traffic), gamma cast in-kernel.
    x_bf16 = x.astype(jnp.bfloat16)
    out_bf16 = jax.block_until_ready(layer_scale(x_bf16, gamma2))
    ref_bf16 = (x_bf16.astype(jnp.float32) * gamma2).astype(jnp.bfloat16)
    assert out_bf16.dtype == jnp.bfloat16
    assert jnp.allclose(out_bf16.astype(jnp.float32), ref_bf16.astype(jnp.float32),
                        atol=1e-2, rtol=1e-2), "bf16 mismatch"

    # 4) dim not a multiple of 128: exercises the lane-folding path.
    D2 = 32
    x_narrow = jax.random.normal(k_x, (2, 8, D2), dtype=jnp.float32)
    g_narrow = jax.random.normal(k_g, (D2,), dtype=jnp.float32)
    out_n = jax.block_until_ready(layer_scale(x_narrow, g_narrow))
    assert jnp.allclose(out_n, x_narrow * g_narrow, atol=1e-6, rtol=1e-6), "narrow-D mismatch"

    # 5) ragged row count: Pallas partial-last-block path.
    x_ragged = jax.random.normal(k_x, (3, 5, D), dtype=jnp.float32)
    out_r = jax.block_until_ready(layer_scale(x_ragged, gamma2))
    assert jnp.allclose(out_r, x_ragged * gamma2, atol=1e-6, rtol=1e-6), "ragged mismatch"

    # 6) inplace=True path: output aliased onto x's buffer.
    ref_ip = x * gamma2
    out_ip = jax.block_until_ready(layer_scale(x, gamma2, inplace=True))
    assert jnp.allclose(out_ip, ref_ip, atol=1e-6, rtol=1e-6), "inplace mismatch"

    # TODO(synk): true in-place mutation (x.mul_) is not expressible on immutable
    # JAX arrays; inplace=True maps to input_output_aliases buffer aliasing.
    print("KERNEL_OK")
</pallas_src>

<mosaic_0001>
module attributes {stable_mosaic.version = 11 : i64} {
  func.func @_layer_scale_kernel(%arg0: i32, %arg1: memref<32x128xf32, #tpu.memory_space<vmem>>, %arg2: memref<1x128xf32, #tpu.memory_space<vmem>>, %arg3: memref<32x128xf32, #tpu.memory_space<vmem>>) attributes {dimension_semantics = [#tpu.dimension_semantics<parallel>], iteration_bounds = array<i64: 1>, scalar_prefetch = 0 : i64, scratch_operands = 0 : i64, tpu.core_type = #tpu.core_type<tc>, window_params = [{transform_indices = @transform_0, window_bounds = array<i64: 32, 128>}, {pipeline_mode = #tpu.pipeline_mode<synchronous>, transform_indices = @transform_1, window_bounds = array<i64: 1, 128>}, {transform_indices = @transform_2, window_bounds = array<i64: 32, 128>}]} {
    %c0 = arith.constant 0 : index
    %c0_0 = arith.constant 0 : index
    %0 = vector.load %arg1[%c0, %c0_0] : memref<32x128xf32, #tpu.memory_space<vmem>>, vector<32x128xf32>
    %c0_1 = arith.constant 0 : index
    %c0_2 = arith.constant 0 : index
    %1 = vector.load %arg2[%c0_1, %c0_2] : memref<1x128xf32, #tpu.memory_space<vmem>>, vector<1x128xf32>
    %2 = vector.broadcast %1 : vector<1x128xf32> to vector<32x128xf32>
    %3 = arith.mulf %0, %2 : vector<32x128xf32>
    %c0_3 = arith.constant 0 : index
    %c0_4 = arith.constant 0 : index
    %4 = vector.load %arg3[%c0_3, %c0_4] : memref<32x128xf32, #tpu.memory_space<vmem>>, vector<32x128xf32>
    tpu.vector_store %arg3[%c0_3, %c0_4], %3 {strides = array<i32>} : memref<32x128xf32, #tpu.memory_space<vmem>>, vector<32x128xf32>,
    return
  }
  func.func @transform_0(%arg0: i32) -> (i32, i32) {
    %c0_i32 = arith.constant 0 : i32
    %c0_i32_0 = arith.constant 0 : i32
    return %arg0, %c0_i32 : i32, i32
  }
  func.func @transform_1(%arg0: i32) -> (i32, i32) {
    %c0_i32 = arith.constant 0 : i32
    %c0_i32_0 = arith.constant 0 : i32
    %c0_i32_1 = arith.constant 0 : i32
    return %c0_i32, %c0_i32_0 : i32, i32
  }
  func.func @transform_2(%arg0: i32) -> (i32, i32) {
    %c0_i32 = arith.constant 0 : i32
    %c0_i32_0 = arith.constant 0 : i32
    return %arg0, %c0_i32 : i32, i32
  }
}

</mosaic_0001>

<bundles_post_ra>
// kernel: tpu_custom_call.1
= control target key start
LH: loop header
LB: loop body
LE: loop exit
PB: predicated region body
PF: predicated region fallthrough
CT: control target
= control target key end

     0   :  { %7 = vsyncpa [#allocation3], 0  ;;  %s197_s0 = inlined_call_operand.hbm [shape: f32[32,128], index: 0, kind: input, shape index: {}]   ;;  %s198_s1 = inlined_call_operand.hbm [shape: f32[1,128], index: 1, kind: input, shape index: {}]   ;;  %s199_s2 = inlined_call_operand.hbm [shape: f32[32,128], index: 2, kind: output, shape index: {}]  }
   0x1   :  { %8 = vsyncpa [#allocation6], 0 }
   0x2   :  { %9 = vsyncpa [#allocation4], 0  ;;  %s14_s11 = sshll.u32 %s197_s0, 4  ;;  %s162_s12 = smov [#allocation2]   ;;  %s15_s11 = int_to_ptr.hbm [resolvable:$true] %s14_s11 }
   0x3   :  { %s16_s13 = sshll.u32 %s162_s12, 4  ;;  %s28_s16 = sshll.u32 %s198_s1, 4  ;;  %s17_s13 = int_to_ptr.vmem [resolvable:$true] %s16_s13  ;;  %s29_s16 = int_to_ptr.hbm [resolvable:$true] %s28_s16 }
   0x4   :  { %s163_s17 = smov 128   ;;  %s164_s18 = smov 8  }
   0x5   :  { %22 = dma.hbm_to_vmem [thread:$0]  %s15_s11, 512, %s17_s13, [#allocation3], %s163_s17, %s163_s17, %s164_s18  }
   0x6   :  { %s165_s19 = smov [#allocation5]  }
   0x7   :  { %s30_s20 = sshll.u32 %s165_s19, 4  ;;  %s31_s20 = int_to_ptr.vmem [resolvable:$true] %s30_s20 }
   0x8   :  { %33 = dma.hbm_to_vmem [thread:$0]  %s29_s16, 16, %s31_s20, [#allocation6]  }
   0x9   :  { %156 = dma.done.wait [#allocation3], 512  }
   0xa   :  { %157 = vsyncadd [#allocation3], 4294966784 }
   0xb   :  { %158 = dma.done.wait [#allocation6], 16  }
   0xc   :  { %159 = vsyncadd [#allocation6], 4294967280  ;;  %v42_v0 = vld [vmem:[#allocation2] sm:$0xff]  ;;  %v43_v2 = vld [vmem:[#allocation2 + $0x8] sm:$0xff]  ;;  %s166_s0 = smov [#allocation7]   ;;  %s64_s23 = sshll.u32 %s199_s2, 4  ;;  %s65_s23 = int_to_ptr.hbm [resolvable:$true] %s64_s23 }
   0xd   :  { %v83_v1 = vld [vmem:[#allocation5] ss:$0 sm:$0xff]  ;;  %v44_v3 = vld [vmem:[#allocation2 + $0x10] sm:$0xff]  ;;  %v45_v4 = vld [vmem:[#allocation2 + $0x18] sm:$0xff]  ;;  %s62_s1 = sshll.u32 %s166_s0, 4  ;;  %s63_s1 = int_to_ptr.vmem [resolvable:$true] %s62_s1 }
   0xe   :  { %v50_v5 = vmul.f32 %v83_v1, %v42_v0  ;;  %v51_v6 = vmul.f32 %v83_v1, %v43_v2  ;;  %v52_v7 = vmul.f32 %v83_v1, %v44_v3  ;;  %v53_v8 = vmul.f32 %v83_v1, %v45_v4 }
  0x10   :  { %54 = vst [vmem:[#allocation7] sm:$0xff] %v50_v5 }
  0x11   :  { %55 = vst [vmem:[#allocation7 + $0x8] sm:$0xff] %v51_v6 }
  0x12   :  { %56 = vst [vmem:[#allocation7 + $0x10] sm:$0xff] %v52_v7 }
  0x13   :  { %57 = vst [vmem:[#allocation7 + $0x18] sm:$0xff] %v53_v8 }
  0x14   :  { %70 = dma.vmem_to_hbm [thread:$0]  %s63_s1, 512, %s65_s23, [#allocation4], %s163_s17, %s163_s17, %s164_s18  }
  0x15   :  { %160 = dma.done.wait [#allocation4], 512  }
  0x16   :  { %161 = vsyncadd [#allocation4], 4294966784 }
  0x17   :  { %75 = vsyncpa [#allocation3], 1 }
  0x18   :  { %76 = vsyncpa [#allocation6], 1 }
  0x19   :  { %77 = vsyncpa [#allocation4], 1 }

</bundles_post_ra>
